<compile_context>
chip_gen: v7x
topology: tpu7x:2x2x1
jax: 0.10.0
libtpu: 0.0.40
codegen_flags: <defaults>
</compile_context>

<pallas_src>
import functools

import jax
import jax.numpy as jnp
from jax.experimental import pallas as pl
from jax.experimental.pallas import tpu as pltpu

BN_EPS = 1e-5
OUT_PAD = 128   # lane-dense readout width (final logits padded to 128 lanes)
EMB_PAD = 8     # embedding-table rows padded to a sublane multiple


# ------------------------------ Pallas kernel --------------------------------

def fused_gcn_kernel(tok_ref, emb_ref, a_ref, wl_ref, bl_ref,
                     w1_ref, b1_ref, w2_ref, b2_ref, w3_ref, b3_ref,
                     o_ref, *, n_layers, vocab):
    """Whole GCNNet_pyg forward in one kernel body.

    Embedding lookup, 4 GCN layers (BN folded) and the 3-linear MLP readout
    all run on VMEM-resident operands; h is carried as a value across the
    statically-unrolled layer loop (never written to HBM).  MXU matmuls take
    bf16 inputs with f32 accumulation; bias / ReLU / residual arithmetic is
    f32.
    """
    # ---- Embedding lookup (vocab is tiny -> exact f32 masked accumulate) ----
    tok = tok_ref[...]                                    # (N, 1) int32
    h = jnp.zeros((tok.shape[0], emb_ref.shape[1]), jnp.float32)
    for v in range(vocab):                                # static unroll
        mask = (tok == v).astype(jnp.float32)             # (N, 1)
        h = h + mask * emb_ref[pl.ds(v, 1), :]            # (N,1)*(1,H) -> (N,H)

    a = a_ref[...]                                        # (N, N) bf16, A_hat

    # ---- GCN stack: h = h + relu(A_hat @ (h @ W') + b')  (BN folded) ----
    for l in range(n_layers):                             # static unroll
        ah = jnp.dot(a, h.astype(jnp.bfloat16),
                     preferred_element_type=jnp.float32)
        z = jnp.dot(ah.astype(jnp.bfloat16), wl_ref[l],
                    preferred_element_type=jnp.float32) + bl_ref[l]
        h = h + jnp.maximum(z, 0.0)                       # ReLU + residual

    # ---- MLPReadout: H -> H/2 -> H/4 (relu) -> 128 (zero-padded logits) ----
    y = jnp.dot(h.astype(jnp.bfloat16), w1_ref[...],
                preferred_element_type=jnp.float32) + b1_ref[...]
    y = jnp.maximum(y, 0.0)
    y = jnp.dot(y.astype(jnp.bfloat16), w2_ref[...],
                preferred_element_type=jnp.float32) + b2_ref[...]
    y = jnp.maximum(y, 0.0)
    o_ref[...] = jnp.dot(y.astype(jnp.bfloat16), w3_ref[...],
                         preferred_element_type=jnp.float32) + b3_ref[...]


# ------------------------------ Pallas wrapper --------------------------------

def _full(shape):
    zeros = (0,) * len(shape)
    return pl.BlockSpec(shape, lambda i, _z=zeros: _z)


@functools.partial(jax.jit, static_argnames=("n_layers", "vocab", "n_classes"))
def gcn_forward(fused, tokens2d, a_hat_bf16, *, n_layers, vocab, n_classes):
    n = tokens2d.shape[0]
    hdim = fused["emb"].shape[1]

    args = (tokens2d, fused["emb"], a_hat_bf16,
            fused["wl"], fused["bl"],
            fused["w1"], fused["b1"],
            fused["w2"], fused["b2"],
            fused["w3"], fused["b3"])

    flops = (n_layers * 2 * (n * n * hdim + n * hdim * hdim)
             + 2 * (n * hdim * (hdim // 2)
                    + n * (hdim // 2) * (hdim // 4)
                    + n * (hdim // 4) * OUT_PAD))
    bytes_accessed = (sum(int(x.size) * x.dtype.itemsize for x in args)
                      + n * OUT_PAD * 4)

    kernel = functools.partial(fused_gcn_kernel, n_layers=n_layers, vocab=vocab)
    out = pl.pallas_call(
        kernel,
        out_shape=jax.ShapeDtypeStruct((n, OUT_PAD), jnp.float32),
        grid_spec=pltpu.PrefetchScalarGridSpec(
            num_scalar_prefetch=0,
            grid=(1,),                                   # whole graph per step
            in_specs=[_full(x.shape) for x in args],
            out_specs=_full((n, OUT_PAD)),
        ),
        compiler_params=pltpu.CompilerParams(
            dimension_semantics=("arbitrary",)),
        cost_estimate=pl.CostEstimate(flops=flops, transcendentals=0,
                                      bytes_accessed=bytes_accessed),
    )(*args)
    return out[:, :n_classes]                            # drop lane padding


# ------------------------------- Plain-JAX glue -------------------------------

def build_norm_adj(edge_index, n):
    """Dense D^-1/2 (A + I) D^-1/2 (PyG gcn_norm). Hoisted: topology is static."""
    src, dst = edge_index[0], edge_index[1]
    loops = jnp.arange(n, dtype=src.dtype)
    src = jnp.concatenate([src, loops])
    dst = jnp.concatenate([dst, loops])
    ones = jnp.ones(src.shape[0], dtype=jnp.float32)
    deg = jnp.zeros((n,), jnp.float32).at[dst].add(ones)
    dinv = jnp.where(deg > 0, 1.0 / jnp.sqrt(deg), 0.0)
    vals = dinv[src] * dinv[dst]
    return jnp.zeros((n, n), jnp.float32).at[dst, src].add(vals)


def init_params(key, in_dim_node, hidden, n_classes, n_layers):
    keys = jax.random.split(key, 1 + n_layers + 3)
    p = {"emb": jax.random.normal(keys[0], (in_dim_node, hidden), jnp.float32) * 0.1}
    layers = []
    for i in range(n_layers):
        kw, kb, kg, kbe, km = jax.random.split(keys[1 + i], 5)
        layers.append(dict(
            w=jax.random.normal(kw, (hidden, hidden), jnp.float32) / jnp.sqrt(hidden),
            b=jax.random.normal(kb, (1, hidden), jnp.float32) * 0.05,
            gamma=1.0 + 0.05 * jax.random.normal(kg, (1, hidden), jnp.float32),
            beta=0.05 * jax.random.normal(kbe, (1, hidden), jnp.float32),
            mean=0.01 * jax.random.normal(km, (1, hidden), jnp.float32),
            var=jnp.ones((1, hidden), jnp.float32),
        ))
    p["layers"] = layers
    # MLPReadout(out_dim=hidden, n_classes, L=2): H -> H/2 -> H/4 -> n_classes
    dims = [hidden, hidden // 2, hidden // 4, n_classes]
    mlp = []
    for i in range(3):
        kw, kb = jax.random.split(keys[1 + n_layers + i], 2)
        mlp.append((
            jax.random.normal(kw, (dims[i], dims[i + 1]), jnp.float32) / jnp.sqrt(dims[i]),
            jax.random.normal(kb, (1, dims[i + 1]), jnp.float32) * 0.05,
        ))
    p["mlp"] = mlp
    return p


def prepare_fused_params(params):
    """Fold eval-mode BN into W/b; pad emb rows + final logits; cast for MXU."""
    hidden = params["emb"].shape[1]
    wl, bl = [], []
    for lyr in params["layers"]:
        s = lyr["gamma"] * jax.lax.rsqrt(lyr["var"] + BN_EPS)      # (1, H)
        wl.append((lyr["w"] * s).astype(jnp.bfloat16))             # column scale
        bl.append((lyr["b"] - lyr["mean"]) * s + lyr["beta"])      # (1, H) f32

    emb = params["emb"]
    emb_p = jnp.zeros((EMB_PAD, hidden), jnp.float32).at[:emb.shape[0]].set(emb)

    fused = dict(
        emb=emb_p,                                                 # (8, H)  f32
        wl=jnp.stack(wl, axis=0),                                  # (L,H,H) bf16
        bl=jnp.stack(bl, axis=0),                                  # (L,1,H) f32
    )
    (w1, b1), (w2, b2), (w3, b3) = params["mlp"]
    fused["w1"] = w1.astype(jnp.bfloat16); fused["b1"] = b1
    fused["w2"] = w2.astype(jnp.bfloat16); fused["b2"] = b2
    # Lane-dense readout: zero-pad logits dim to 128 (exact: zero cols = zero).
    w3p = jnp.zeros((w3.shape[0], OUT_PAD), jnp.float32).at[:, :w3.shape[1]].set(w3)
    b3p = jnp.zeros((1, OUT_PAD), jnp.float32).at[:, :b3.shape[1]].set(b3)
    fused["w3"] = w3p.astype(jnp.bfloat16); fused["b3"] = b3p
    return fused


# ----------------------------------- main -------------------------------------

if __name__ == "__main__":
    N_NODES = 64       # nodes in the (single) SBM graph
    IN_DIM_NODE = 3    # node token vocabulary
    HIDDEN = 64        # hidden_dim == out_dim
    N_CLASSES = 6
    N_LAYERS = 4
    N_EDGES = 256

    key = jax.random.PRNGKey(0)
    k_tok, k_edge, k_param = jax.random.split(key, 3)

    tokens = jax.random.randint(k_tok, (N_NODES,), 0, IN_DIM_NODE, dtype=jnp.int32)
    edge_index = jax.random.randint(k_edge, (2, N_EDGES), 0, N_NODES, dtype=jnp.int32)
    e_feat = jnp.ones((N_EDGES, 1), jnp.float32)  # edge features: unused by forward

    params = init_params(k_param, IN_DIM_NODE, HIDDEN, N_CLASSES, N_LAYERS)

    # Hoisted out of the per-forward path (static graph / static params).
    a_hat = build_norm_adj(edge_index, N_NODES).astype(jnp.bfloat16)   # cast once
    fused = prepare_fused_params(params)
    tokens2d = tokens.reshape(N_NODES, 1)

    out = gcn_forward(fused, tokens2d, a_hat,
                      n_layers=N_LAYERS, vocab=IN_DIM_NODE, n_classes=N_CLASSES)
    out = jax.block_until_ready(out)
    assert out.shape == (N_NODES, N_CLASSES), out.shape
    assert bool(jnp.all(jnp.isfinite(out)))
    print("KERNEL_OK")
</pallas_src>

<mosaic_0001>
module attributes {stable_mosaic.version = 11 : i64} {
  func.func @fused_gcn_kernel(%arg0: i32, %arg1: memref<64x1xi32, #tpu.memory_space<vmem>>, %arg2: memref<8x64xf32, #tpu.memory_space<vmem>>, %arg3: memref<64x64xbf16, #tpu.memory_space<vmem>>, %arg4: memref<4x64x64xbf16, #tpu.memory_space<vmem>>, %arg5: memref<4x1x64xf32, #tpu.memory_space<vmem>>, %arg6: memref<64x32xbf16, #tpu.memory_space<vmem>>, %arg7: memref<1x32xf32, #tpu.memory_space<vmem>>, %arg8: memref<32x16xbf16, #tpu.memory_space<vmem>>, %arg9: memref<1x16xf32, #tpu.memory_space<vmem>>, %arg10: memref<16x128xbf16, #tpu.memory_space<vmem>>, %arg11: memref<1x128xf32, #tpu.memory_space<vmem>>, %arg12: memref<64x128xf32, #tpu.memory_space<vmem>>) attributes {dimension_semantics = [#tpu.dimension_semantics<arbitrary>], iteration_bounds = array<i64: 1>, scalar_prefetch = 0 : i64, scratch_operands = 0 : i64, tpu.core_type = #tpu.core_type<tc>, window_params = [{pipeline_mode = #tpu.pipeline_mode<synchronous>, transform_indices = @transform_0, window_bounds = array<i64: 64, 1>}, {pipeline_mode = #tpu.pipeline_mode<synchronous>, transform_indices = @transform_1, window_bounds = array<i64: 8, 64>}, {pipeline_mode = #tpu.pipeline_mode<synchronous>, transform_indices = @transform_2, window_bounds = array<i64: 64, 64>}, {pipeline_mode = #tpu.pipeline_mode<synchronous>, transform_indices = @transform_3, window_bounds = array<i64: 4, 64, 64>}, {pipeline_mode = #tpu.pipeline_mode<synchronous>, transform_indices = @transform_4, window_bounds = array<i64: 4, 1, 64>}, {pipeline_mode = #tpu.pipeline_mode<synchronous>, transform_indices = @transform_5, window_bounds = array<i64: 64, 32>}, {pipeline_mode = #tpu.pipeline_mode<synchronous>, transform_indices = @transform_6, window_bounds = array<i64: 1, 32>}, {pipeline_mode = #tpu.pipeline_mode<synchronous>, transform_indices = @transform_7, window_bounds = array<i64: 32, 16>}, {pipeline_mode = #tpu.pipeline_mode<synchronous>, transform_indices = @transform_8, window_bounds = array<i64: 1, 16>}, {pipeline_mode = #tpu.pipeline_mode<synchronous>, transform_indices = @transform_9, window_bounds = array<i64: 16, 128>}, {pipeline_mode = #tpu.pipeline_mode<synchronous>, transform_indices = @transform_10, window_bounds = array<i64: 1, 128>}, {pipeline_mode = #tpu.pipeline_mode<synchronous>, transform_indices = @transform_11, window_bounds = array<i64: 64, 128>}]} {
    %c0 = arith.constant 0 : index
    %c0_0 = arith.constant 0 : index
    %0 = vector.load %arg1[%c0, %c0_0] : memref<64x1xi32, #tpu.memory_space<vmem>>, vector<64x1xi32>
    %cst = arith.constant 0.000000e+00 : f32
    %1 = vector.broadcast %cst : f32 to vector<64x64xf32>
    %c0_i32 = arith.constant 0 : i32
    %2 = vector.broadcast %c0_i32 : i32 to vector<64x1xi32>
    %3 = arith.cmpi eq, %0, %2 : vector<64x1xi32>
    %4 = arith.extui %3 : vector<64x1xi1> to vector<64x1xi32>
    %5 = arith.sitofp %4 : vector<64x1xi32> to vector<64x1xf32>
    %c0_1 = arith.constant 0 : index
    %c0_2 = arith.constant 0 : index
    %6 = vector.load %arg2[%c0_1, %c0_2] : memref<8x64xf32, #tpu.memory_space<vmem>>, vector<1x64xf32>
    %7 = vector.broadcast %5 : vector<64x1xf32> to vector<64x64xf32>
    %8 = vector.broadcast %6 : vector<1x64xf32> to vector<64x64xf32>
    %9 = arith.mulf %7, %8 : vector<64x64xf32>
    %10 = arith.addf %1, %9 : vector<64x64xf32>
    %c1_i32 = arith.constant 1 : i32
    %11 = vector.broadcast %c1_i32 : i32 to vector<64x1xi32>
    %12 = arith.cmpi eq, %0, %11 : vector<64x1xi32>
    %13 = arith.extui %12 : vector<64x1xi1> to vector<64x1xi32>
    %14 = arith.sitofp %13 : vector<64x1xi32> to vector<64x1xf32>
    %c1 = arith.constant 1 : index
    %c0_3 = arith.constant 0 : index
    %15 = vector.load %arg2[%c1, %c0_3] : memref<8x64xf32, #tpu.memory_space<vmem>>, vector<1x64xf32>
    %16 = vector.broadcast %14 : vector<64x1xf32> to vector<64x64xf32>
    %17 = vector.broadcast %15 : vector<1x64xf32> to vector<64x64xf32>
    %18 = arith.mulf %16, %17 : vector<64x64xf32>
    %19 = arith.addf %10, %18 : vector<64x64xf32>
    %c2_i32 = arith.constant 2 : i32
    %20 = vector.broadcast %c2_i32 : i32 to vector<64x1xi32>
    %21 = arith.cmpi eq, %0, %20 : vector<64x1xi32>
    %22 = arith.extui %21 : vector<64x1xi1> to vector<64x1xi32>
    %23 = arith.sitofp %22 : vector<64x1xi32> to vector<64x1xf32>
    %c2 = arith.constant 2 : index
    %c0_4 = arith.constant 0 : index
    %24 = vector.load %arg2[%c2, %c0_4] : memref<8x64xf32, #tpu.memory_space<vmem>>, vector<1x64xf32>
    %25 = vector.broadcast %23 : vector<64x1xf32> to vector<64x64xf32>
    %26 = vector.broadcast %24 : vector<1x64xf32> to vector<64x64xf32>
    %27 = arith.mulf %25, %26 : vector<64x64xf32>
    %28 = arith.addf %19, %27 : vector<64x64xf32>
    %c0_5 = arith.constant 0 : index
    %c0_6 = arith.constant 0 : index
    %29 = vector.load %arg3[%c0_5, %c0_6] : memref<64x64xbf16, #tpu.memory_space<vmem>>, vector<64x64xbf16>
    %30 = arith.truncf %28 : vector<64x64xf32> to vector<64x64xbf16>
    %cst_7 = arith.constant dense<0.000000e+00> : vector<64x64xf32>
    %31 = tpu.matmul %29, %30, %cst_7 {dimension_numbers = #tpu.dot_dimension_numbers<[1], [0], [0], [1], [0, 0, 1, 1], [], []>} : vector<64x64xbf16>, vector<64x64xbf16>, vector<64x64xf32> -> vector<64x64xf32>
    %32 = arith.truncf %31 : vector<64x64xf32> to vector<64x64xbf16>
    %c0_8 = arith.constant 0 : index
    %c0_9 = arith.constant 0 : index
    %c0_10 = arith.constant 0 : index
    %33 = vector.load %arg4[%c0_8, %c0_9, %c0_10] : memref<4x64x64xbf16, #tpu.memory_space<vmem>>, vector<1x64x64xbf16>
    %34 = vector.shape_cast %33 : vector<1x64x64xbf16> to vector<64x64xbf16>
    %cst_11 = arith.constant dense<0.000000e+00> : vector<64x64xf32>
    %35 = tpu.matmul %32, %34, %cst_11 {dimension_numbers = #tpu.dot_dimension_numbers<[1], [0], [0], [1], [0, 0, 1, 1], [], []>} : vector<64x64xbf16>, vector<64x64xbf16>, vector<64x64xf32> -> vector<64x64xf32>
    %c0_12 = arith.constant 0 : index
    %c0_13 = arith.constant 0 : index
    %c0_14 = arith.constant 0 : index
    %36 = vector.load %arg5[%c0_12, %c0_13, %c0_14] : memref<4x1x64xf32, #tpu.memory_space<vmem>>, vector<1x1x64xf32>
    %37 = vector.shape_cast %36 : vector<1x1x64xf32> to vector<1x64xf32>
    %38 = vector.broadcast %37 : vector<1x64xf32> to vector<64x64xf32>
    %39 = arith.addf %35, %38 : vector<64x64xf32>
    %cst_15 = arith.constant 0.000000e+00 : f32
    %40 = vector.broadcast %cst_15 : f32 to vector<64x64xf32>
    %41 = arith.maximumf %39, %40 : vector<64x64xf32>
    %42 = arith.addf %28, %41 : vector<64x64xf32>
    %43 = arith.truncf %42 : vector<64x64xf32> to vector<64x64xbf16>
    %cst_16 = arith.constant dense<0.000000e+00> : vector<64x64xf32>
    %44 = tpu.matmul %29, %43, %cst_16 {dimension_numbers = #tpu.dot_dimension_numbers<[1], [0], [0], [1], [0, 0, 1, 1], [], []>} : vector<64x64xbf16>, vector<64x64xbf16>, vector<64x64xf32> -> vector<64x64xf32>
    %45 = arith.truncf %44 : vector<64x64xf32> to vector<64x64xbf16>
    %c1_17 = arith.constant 1 : index
    %c0_18 = arith.constant 0 : index
    %c0_19 = arith.constant 0 : index
    %46 = vector.load %arg4[%c1_17, %c0_18, %c0_19] : memref<4x64x64xbf16, #tpu.memory_space<vmem>>, vector<1x64x64xbf16>
    %47 = vector.shape_cast %46 : vector<1x64x64xbf16> to vector<64x64xbf16>
    %cst_20 = arith.constant dense<0.000000e+00> : vector<64x64xf32>
    %48 = tpu.matmul %45, %47, %cst_20 {dimension_numbers = #tpu.dot_dimension_numbers<[1], [0], [0], [1], [0, 0, 1, 1], [], []>} : vector<64x64xbf16>, vector<64x64xbf16>, vector<64x64xf32> -> vector<64x64xf32>
    %c1_21 = arith.constant 1 : index
    %c0_22 = arith.constant 0 : index
    %c0_23 = arith.constant 0 : index
    %49 = vector.load %arg5[%c1_21, %c0_22, %c0_23] : memref<4x1x64xf32, #tpu.memory_space<vmem>>, vector<1x1x64xf32>
    %50 = vector.shape_cast %49 : vector<1x1x64xf32> to vector<1x64xf32>
    %51 = vector.broadcast %50 : vector<1x64xf32> to vector<64x64xf32>
    %52 = arith.addf %48, %51 : vector<64x64xf32>
    %cst_24 = arith.constant 0.000000e+00 : f32
    %53 = vector.broadcast %cst_24 : f32 to vector<64x64xf32>
    %54 = arith.maximumf %52, %53 : vector<64x64xf32>
    %55 = arith.addf %42, %54 : vector<64x64xf32>
    %56 = arith.truncf %55 : vector<64x64xf32> to vector<64x64xbf16>
    %cst_25 = arith.constant dense<0.000000e+00> : vector<64x64xf32>
    %57 = tpu.matmul %29, %56, %cst_25 {dimension_numbers = #tpu.dot_dimension_numbers<[1], [0], [0], [1], [0, 0, 1, 1], [], []>} : vector<64x64xbf16>, vector<64x64xbf16>, vector<64x64xf32> -> vector<64x64xf32>
    %58 = arith.truncf %57 : vector<64x64xf32> to vector<64x64xbf16>
    %c2_26 = arith.constant 2 : index
    %c0_27 = arith.constant 0 : index
    %c0_28 = arith.constant 0 : index
    %59 = vector.load %arg4[%c2_26, %c0_27, %c0_28] : memref<4x64x64xbf16, #tpu.memory_space<vmem>>, vector<1x64x64xbf16>
    %60 = vector.shape_cast %59 : vector<1x64x64xbf16> to vector<64x64xbf16>
    %cst_29 = arith.constant dense<0.000000e+00> : vector<64x64xf32>
    %61 = tpu.matmul %58, %60, %cst_29 {dimension_numbers = #tpu.dot_dimension_numbers<[1], [0], [0], [1], [0, 0, 1, 1], [], []>} : vector<64x64xbf16>, vector<64x64xbf16>, vector<64x64xf32> -> vector<64x64xf32>
    %c2_30 = arith.constant 2 : index
    %c0_31 = arith.constant 0 : index
    %c0_32 = arith.constant 0 : index
    %62 = vector.load %arg5[%c2_30, %c0_31, %c0_32] : memref<4x1x64xf32, #tpu.memory_space<vmem>>, vector<1x1x64xf32>
    %63 = vector.shape_cast %62 : vector<1x1x64xf32> to vector<1x64xf32>
    %64 = vector.broadcast %63 : vector<1x64xf32> to vector<64x64xf32>
    %65 = arith.addf %61, %64 : vector<64x64xf32>
    %cst_33 = arith.constant 0.000000e+00 : f32
    %66 = vector.broadcast %cst_33 : f32 to vector<64x64xf32>
    %67 = arith.maximumf %65, %66 : vector<64x64xf32>
    %68 = arith.addf %55, %67 : vector<64x64xf32>
    %69 = arith.truncf %68 : vector<64x64xf32> to vector<64x64xbf16>
    %cst_34 = arith.constant dense<0.000000e+00> : vector<64x64xf32>
    %70 = tpu.matmul %29, %69, %cst_34 {dimension_numbers = #tpu.dot_dimension_numbers<[1], [0], [0], [1], [0, 0, 1, 1], [], []>} : vector<64x64xbf16>, vector<64x64xbf16>, vector<64x64xf32> -> vector<64x64xf32>
    %71 = arith.truncf %70 : vector<64x64xf32> to vector<64x64xbf16>
    %c3 = arith.constant 3 : index
    %c0_35 = arith.constant 0 : index
    %c0_36 = arith.constant 0 : index
    %72 = vector.load %arg4[%c3, %c0_35, %c0_36] : memref<4x64x64xbf16, #tpu.memory_space<vmem>>, vector<1x64x64xbf16>
    %73 = vector.shape_cast %72 : vector<1x64x64xbf16> to vector<64x64xbf16>
    %cst_37 = arith.constant dense<0.000000e+00> : vector<64x64xf32>
    %74 = tpu.matmul %71, %73, %cst_37 {dimension_numbers = #tpu.dot_dimension_numbers<[1], [0], [0], [1], [0, 0, 1, 1], [], []>} : vector<64x64xbf16>, vector<64x64xbf16>, vector<64x64xf32> -> vector<64x64xf32>
    %c3_38 = arith.constant 3 : index
    %c0_39 = arith.constant 0 : index
    %c0_40 = arith.constant 0 : index
    %75 = vector.load %arg5[%c3_38, %c0_39, %c0_40] : memref<4x1x64xf32, #tpu.memory_space<vmem>>, vector<1x1x64xf32>
    %76 = vector.shape_cast %75 : vector<1x1x64xf32> to vector<1x64xf32>
    %77 = vector.broadcast %76 : vector<1x64xf32> to vector<64x64xf32>
    %78 = arith.addf %74, %77 : vector<64x64xf32>
    %cst_41 = arith.constant 0.000000e+00 : f32
    %79 = vector.broadcast %cst_41 : f32 to vector<64x64xf32>
    %80 = arith.maximumf %78, %79 : vector<64x64xf32>
    %81 = arith.addf %68, %80 : vector<64x64xf32>
    %82 = arith.truncf %81 : vector<64x64xf32> to vector<64x64xbf16>
    %c0_42 = arith.constant 0 : index
    %c0_43 = arith.constant 0 : index
    %83 = vector.load %arg6[%c0_42, %c0_43] : memref<64x32xbf16, #tpu.memory_space<vmem>>, vector<64x32xbf16>
    %cst_44 = arith.constant dense<0.000000e+00> : vector<64x32xf32>
    %84 = tpu.matmul %82, %83, %cst_44 {dimension_numbers = #tpu.dot_dimension_numbers<[1], [0], [0], [1], [0, 0, 1, 1], [], []>} : vector<64x64xbf16>, vector<64x32xbf16>, vector<64x32xf32> -> vector<64x32xf32>
    %c0_45 = arith.constant 0 : index
    %c0_46 = arith.constant 0 : index
    %85 = vector.load %arg7[%c0_45, %c0_46] : memref<1x32xf32, #tpu.memory_space<vmem>>, vector<1x32xf32>
    %86 = vector.broadcast %85 : vector<1x32xf32> to vector<64x32xf32>
    %87 = arith.addf %84, %86 : vector<64x32xf32>
    %cst_47 = arith.constant 0.000000e+00 : f32
    %88 = vector.broadcast %cst_47 : f32 to vector<64x32xf32>
    %89 = arith.maximumf %87, %88 : vector<64x32xf32>
    %90 = arith.truncf %89 : vector<64x32xf32> to vector<64x32xbf16>
    %c0_48 = arith.constant 0 : index
    %c0_49 = arith.constant 0 : index
    %91 = vector.load %arg8[%c0_48, %c0_49] : memref<32x16xbf16, #tpu.memory_space<vmem>>, vector<32x16xbf16>
    %cst_50 = arith.constant dense<0.000000e+00> : vector<64x16xf32>
    %92 = tpu.matmul %90, %91, %cst_50 {dimension_numbers = #tpu.dot_dimension_numbers<[1], [0], [0], [1], [0, 0, 1, 1], [], []>} : vector<64x32xbf16>, vector<32x16xbf16>, vector<64x16xf32> -> vector<64x16xf32>
    %c0_51 = arith.constant 0 : index
    %c0_52 = arith.constant 0 : index
    %93 = vector.load %arg9[%c0_51, %c0_52] : memref<1x16xf32, #tpu.memory_space<vmem>>, vector<1x16xf32>
    %94 = vector.broadcast %93 : vector<1x16xf32> to vector<64x16xf32>
    %95 = arith.addf %92, %94 : vector<64x16xf32>
    %cst_53 = arith.constant 0.000000e+00 : f32
    %96 = vector.broadcast %cst_53 : f32 to vector<64x16xf32>
    %97 = arith.maximumf %95, %96 : vector<64x16xf32>
    %98 = arith.truncf %97 : vector<64x16xf32> to vector<64x16xbf16>
    %c0_54 = arith.constant 0 : index
    %c0_55 = arith.constant 0 : index
    %99 = vector.load %arg10[%c0_54, %c0_55] : memref<16x128xbf16, #tpu.memory_space<vmem>>, vector<16x128xbf16>
    %cst_56 = arith.constant dense<0.000000e+00> : vector<64x128xf32>
    %100 = tpu.matmul %98, %99, %cst_56 {dimension_numbers = #tpu.dot_dimension_numbers<[1], [0], [0], [1], [0, 0, 1, 1], [], []>} : vector<64x16xbf16>, vector<16x128xbf16>, vector<64x128xf32> -> vector<64x128xf32>
    %c0_57 = arith.constant 0 : index
    %c0_58 = arith.constant 0 : index
    %101 = vector.load %arg11[%c0_57, %c0_58] : memref<1x128xf32, #tpu.memory_space<vmem>>, vector<1x128xf32>
    %102 = vector.broadcast %101 : vector<1x128xf32> to vector<64x128xf32>
    %103 = arith.addf %100, %102 : vector<64x128xf32>
    %c0_59 = arith.constant 0 : index
    %c0_60 = arith.constant 0 : index
    %104 = vector.load %arg12[%c0_59, %c0_60] : memref<64x128xf32, #tpu.memory_space<vmem>>, vector<64x128xf32>
    tpu.vector_store %arg12[%c0_59, %c0_60], %103 {strides = array<i32>} : memref<64x128xf32, #tpu.memory_space<vmem>>, vector<64x128xf32>,
    return
  }
  func.func @transform_0(%arg0: i32) -> (i32, i32) {
    %c0_i32 = arith.constant 0 : i32
    %c0_i32_0 = arith.constant 0 : i32
    %c0_i32_1 = arith.constant 0 : i32
    return %c0_i32, %c0_i32_0 : i32, i32
  }
  func.func @transform_1(%arg0: i32) -> (i32, i32) {
    %c0_i32 = arith.constant 0 : i32
    %c0_i32_0 = arith.constant 0 : i32
    %c0_i32_1 = arith.constant 0 : i32
    return %c0_i32, %c0_i32_0 : i32, i32
  }
  func.func @transform_2(%arg0: i32) -> (i32, i32) {
    %c0_i32 = arith.constant 0 : i32
    %c0_i32_0 = arith.constant 0 : i32
    %c0_i32_1 = arith.constant 0 : i32
    return %c0_i32, %c0_i32_0 : i32, i32
  }
  func.func @transform_3(%arg0: i32) -> (i32, i32, i32) {
    %c0_i32 = arith.constant 0 : i32
    %c0_i32_0 = arith.constant 0 : i32
    %c0_i32_1 = arith.constant 0 : i32
    %c0_i32_2 = arith.constant 0 : i32
    return %c0_i32, %c0_i32_0, %c0_i32_1 : i32, i32, i32
  }
  func.func @transform_4(%arg0: i32) -> (i32, i32, i32) {
    %c0_i32 = arith.constant 0 : i32
    %c0_i32_0 = arith.constant 0 : i32
    %c0_i32_1 = arith.constant 0 : i32
    %c0_i32_2 = arith.constant 0 : i32
    return %c0_i32, %c0_i32_0, %c0_i32_1 : i32, i32, i32
  }
  func.func @transform_5(%arg0: i32) -> (i32, i32) {
    %c0_i32 = arith.constant 0 : i32
    %c0_i32_0 = arith.constant 0 : i32
    %c0_i32_1 = arith.constant 0 : i32
    return %c0_i32, %c0_i32_0 : i32, i32
  }
  func.func @transform_6(%arg0: i32) -> (i32, i32) {
    %c0_i32 = arith.constant 0 : i32
    %c0_i32_0 = arith.constant 0 : i32
    %c0_i32_1 = arith.constant 0 : i32
    return %c0_i32, %c0_i32_0 : i32, i32
  }
  func.func @transform_7(%arg0: i32) -> (i32, i32) {
    %c0_i32 = arith.constant 0 : i32
    %c0_i32_0 = arith.constant 0 : i32
    %c0_i32_1 = arith.constant 0 : i32
    return %c0_i32, %c0_i32_0 : i32, i32
  }
  func.func @transform_8(%arg0: i32) -> (i32, i32) {
    %c0_i32 = arith.constant 0 : i32
    %c0_i32_0 = arith.constant 0 : i32
    %c0_i32_1 = arith.constant 0 : i32
    return %c0_i32, %c0_i32_0 : i32, i32
  }
  func.func @transform_9(%arg0: i32) -> (i32, i32) {
    %c0_i32 = arith.constant 0 : i32
    %c0_i32_0 = arith.constant 0 : i32
    %c0_i32_1 = arith.constant 0 : i32
    return %c0_i32, %c0_i32_0 : i32, i32
  }
  func.func @transform_10(%arg0: i32) -> (i32, i32) {
    %c0_i32 = arith.constant 0 : i32
    %c0_i32_0 = arith.constant 0 : i32
    %c0_i32_1 = arith.constant 0 : i32
    return %c0_i32, %c0_i32_0 : i32, i32
  }
  func.func @transform_11(%arg0: i32) -> (i32, i32) {
    %c0_i32 = arith.constant 0 : i32
    %c0_i32_0 = arith.constant 0 : i32
    %c0_i32_1 = arith.constant 0 : i32
    return %c0_i32, %c0_i32_0 : i32, i32
  }
}

</mosaic_0001>

<bundles_post_ra>
// kernel: gcn_forward.1
= control target key start
LH: loop header
LB: loop body
LE: loop exit
PB: predicated region body
PF: predicated region fallthrough
CT: control target
= control target key end

     0   :  { %16 = vsyncpa [#allocation3], 0  ;;  %s2549_s0 = inlined_call_operand.vmem [shape: s32[64,1], index: 0, kind: input, shape index: {}]   ;;  %s2550_s1 = inlined_call_operand.hbm [shape: f32[8,64], index: 1, kind: input, shape index: {}]   ;;  %s2551_s2 = inlined_call_operand.vmem [shape: bf16[64,64], index: 2, kind: input, shape index: {}]   ;;  %s2552_s3 = inlined_call_operand.vmem [shape: bf16[4,64,64], index: 3, kind: input, shape index: {}]   ;;  %s2553_s4 = inlined_call_operand.vmem [shape: f32[4,1,64], index: 4, kind: input, shape index: {}]   ;;  %s2554_s5 = inlined_call_operand.vmem [shape: bf16[64,32], index: 5, kind: input, shape index: {}]   ;;  %s2555_s6 = inlined_call_operand.vmem [shape: f32[1,32], index: 6, kind: input, shape index: {}]   ;;  %s2556_s7 = inlined_call_operand.vmem [shape: bf16[32,16], index: 7, kind: input, shape index: {}]   ;;  %s2557_s8 = inlined_call_operand.vmem [shape: f32[1,16], index: 8, kind: input, shape index: {}]   ;;  %s2558_s9 = inlined_call_operand.hbm [shape: bf16[16,128], index: 9, kind: input, shape index: {}]   ;;  %s2559_s10 = inlined_call_operand.vmem [shape: f32[1,128], index: 10, kind: input, shape index: {}]   ;;  %s2560_s11 = inlined_call_operand.vmem [shape: f32[64,128], index: 11, kind: output, shape index: {}]  }
   0x1   :  { %17 = vsyncpa [#allocation5], 0  ;;  %s2079_s17 = smov [#allocation2]   ;;  %s2080_s19 = smov [#allocation4]  }
   0x2   :  { %s26_s18 = sshll.u32 %s2079_s17, 4  ;;  %s49_s20 = sshll.u32 %s2080_s19, 4  ;;  %s27_s18 = int_to_ptr.vmem [resolvable:$true] %s26_s18  ;;  %s2145_s20 = int_to_ptr.vmem [resolvable:$true] %s49_s20 }
   0x3   :  { %s2031_s23 = scalar_lea.hbm %s2550_s1, 128 }
   0x4   :  { %p2032_p0 = scmp.ne.s32.totalorder %s2550_s1, %s2031_s23  ;;  %p2035_p1 = scmp.lt.u32.totalorder %s2031_s23, %s2550_s1 }
   0x6   :  { %p2037_p2 = pnand %p2035_p1, %p2032_p0 }
   0x8   :  { %2040 = shalt.err (!%p2037_p2)
}
   0x9   :  { %s2041_s28 = scalar_lea.vmem %s27_s18, 128  ;;  %p2046_p4 = scmp.lt.s32.totalorder %s27_s18, %s27_s18 }
   0xa   :  { %p2042_p3 = scmp.ne.s32.totalorder %s27_s18, %s2041_s28  ;;  %p2047_p5 = scmp.lt.s32.totalorder %s2041_s28, %s2041_s28 }
   0xc   :  { %p2048_p6 = por %p2047_p5, %p2046_p4 }
   0xe   :  { %p2049_p7 = pnand %p2048_p6, %p2042_p3 }
  0x10   :  { %2052 = shalt.err (!%p2049_p7)
}
  0x11   :  { %29 = dma.hbm_to_vmem [thread:$0]  %s2550_s1, 128, %s27_s18, [#allocation3]  }
  0x12   :  { %s2053_s14 = scalar_lea.hbm %s2558_s9, 128 }
  0x13   :  { %p2054_p8 = scmp.ne.s32.totalorder %s2558_s9, %s2053_s14  ;;  %p2057_p9 = scmp.lt.u32.totalorder %s2053_s14, %s2558_s9 }
  0x15   :  { %p2059_p10 = pnand %p2057_p9, %p2054_p8 }
  0x17   :  { %2062 = shalt.err (!%p2059_p10)
}
  0x18   :  { %s2063_s21 = scalar_lea.vmem %s2145_s20, 128  ;;  %p2068_p12 = scmp.lt.s32.totalorder %s2145_s20, %s2145_s20 }
  0x19   :  { %p2064_p11 = scmp.ne.s32.totalorder %s2145_s20, %s2063_s21  ;;  %p2069_p13 = scmp.lt.s32.totalorder %s2063_s21, %s2063_s21 }
  0x1b   :  { %p2070_p0 = por %p2069_p13, %p2068_p12 }
  0x1d   :  { %p2071_p1 = pnand %p2070_p0, %p2064_p11 }
  0x1f   :  { %2074 = shalt.err (!%p2071_p1)
}
  0x20   :  { %s2081_s1 = smov 64   ;;  %s2082_s18 = smov 4  }
  0x21   :  { %55 = dma.hbm_to_vmem [thread:$0]  %s2558_s9, 128, %s2145_s20, [#allocation5], %s2081_s1, %s2081_s1, %s2082_s18  }
  0x22   :  { %2075 = dma.done.wait [#allocation3], 128  }
  0x23   :  { %2076 = vsyncadd [#allocation3], 4294967168 }
  0x24   :  { %2077 = dma.done.wait [#allocation5], 128  }
  0x25   :  { %2078 = vsyncadd [#allocation5], 4294967168  ;;  %v2083_v0 = vmov 0   ;;  %v65_v1 = vld [vmem:[%s2549_s0] sm:$0xff]  ;;  %v66_v2 = vld [vmem:[%s2549_s0 + $0x8] sm:$0xff]  ;;  %v2084_v5 = vmov 0.0  }
  0x26   :  { %1953 = vset.pattern.permute.xlu1 %v2083_v0  ;;  %1942 = vset.pattern.permute.xlu0 %v2083_v0  ;;  %v67_v3 = vld [vmem:[%s2549_s0 + $0x10] sm:$0xff]  ;;  %vm243_vm0 = vcmp.eq.s32.totalorder %v65_v1, 2  ;;  %vm244_vm1 = vcmp.eq.s32.totalorder %v66_v2, 2  ;;  %vm73_vm2 = vcmp.eq.s32.totalorder %v65_v1, 0  ;;  %vm74_vm3 = vcmp.eq.s32.totalorder %v66_v2, 0  ;;  %v68_v4 = vld [vmem:[%s2549_s0 + $0x18] sm:$0xff] }
  0x27   :  { %v1565_v6 = vsel %vm243_vm0, 1.0, %v2084_v5  ;;  %v1566_v7 = vsel %vm244_vm1, 1.0, %v2084_v5  ;;  %v1547_v8 = vsel %vm73_vm2, 1.0, %v2084_v5  ;;  %v1548_v9 = vsel %vm74_vm3, 1.0, %v2084_v5  ;;  %v69_v12 = vld [vmem:[%s2549_s0 + $0x20] sm:$0xff]  ;;  %v70_v18 = vld [vmem:[%s2549_s0 + $0x28] sm:$0xff] }
  0x28   :  { %v1954_v10 = vpack.i.bf16 %v1566_v7, %v1565_v6  ;;  %v1943_v11 = vpack.i.bf16 %v1548_v9, %v1547_v8  ;;  %vm75_vm4 = vcmp.eq.s32.totalorder %v67_v3, 0  ;;  %vm76_vm5 = vcmp.eq.s32.totalorder %v68_v4, 0  ;;  %v71_v21 = vld [vmem:[%s2549_s0 + $0x30] sm:$0xff]  ;;  %v72_v27 = vld [vmem:[%s2549_s0 + $0x38] sm:$0xff]  ;;  %v2203_v46 = vld [vmem:[%s2551_s2] sm:$0xff]  }
  0x29   :  { %v1549_v13 = vsel %vm75_vm4, 1.0, %v2084_v5  ;;  %v1550_v14 = vsel %vm76_vm5, 1.0, %v2084_v5  ;;  %vm158_vm6 = vcmp.eq.s32.totalorder %v65_v1, 1  ;;  %vm159_vm7 = vcmp.eq.s32.totalorder %v66_v2, 1  ;;  %v2008_v47 = vld [vmem:[%s2552_s3] sm:$0xff]   ;;  %v2009_v48 = vld [vmem:[%s2552_s3 + $0x8] sm:$0xff]  }
  0x2a   :  { %1955 = vperm.xlu1 %1953, %v1954_v10   ;;  %1944 = vperm.xlu0 %1942, %v1943_v11   ;;  %v1959_v15 = vpack.i.bf16 %v1550_v14, %v1549_v13  ;;  %v1556_v16 = vsel %vm158_vm6, 1.0, %v2084_v5  ;;  %v1557_v17 = vsel %vm159_vm7, 1.0, %v2084_v5  ;;  %vm245_vm8 = vcmp.eq.s32.totalorder %v67_v3, 2  ;;  %v2010_v49 = vld [vmem:[%s2552_s3 + $0x10] sm:$0xff]   ;;  %v2216_v55 = vld [vmem:[#allocation2 + $0x1] ss:$0 sm:$0xff] }
  0x2b   :  { %v1948_v19 = vpack.i.bf16 %v1557_v17, %v1556_v16  ;;  %vm246_vm9 = vcmp.eq.s32.totalorder %v68_v4, 2  ;;  %v1567_v20 = vsel %vm245_vm8, 1.0, %v2084_v5  ;;  %vm160_vm10 = vcmp.eq.s32.totalorder %v67_v3, 1  ;;  %1778 = vmatprep.subr.bf16.mxu1 %v2008_v47  ;;  %v2218_v57 = vld [vmem:[#allocation2] ss:$0 sm:$0xff] }
  0x2c   :  { %v1568_v22 = vsel %vm246_vm9, 1.0, %v2084_v5  ;;  %vm161_vm11 = vcmp.eq.s32.totalorder %v68_v4, 1  ;;  %v1558_v23 = vsel %vm160_vm10, 1.0, %v2084_v5  ;;  %vm162_vm12 = vcmp.eq.s32.totalorder %v69_v12, 1  ;;  %1779 = vmatpush3.bf16.msra.mxu1 %v2008_v47  ;;  %v2220_v62 = vld [vmem:[#allocation2 + $0x2] ss:$0 sm:$0xff] }
  0x2d   :  { %v1969_v24 = vpack.i.bf16 %v1568_v22, %v1567_v20  ;;  %v1559_v25 = vsel %vm161_vm11, 1.0, %v2084_v5  ;;  %vm163_vm13 = vcmp.eq.s32.totalorder %v70_v18, 1  ;;  %v1560_v26 = vsel %vm162_vm12, 1.0, %v2084_v5  ;;  %1780 = vmatprep.subr.bf16.mxu1 %v2009_v48 }
  0x2e   :  { %1960 = vperm.xlu1 %1953, %v1959_v15   ;;  %1949 = vperm.xlu0 %1942, %v1948_v19   ;;  %v1964_v28 = vpack.i.bf16 %v1559_v25, %v1558_v23  ;;  %v1561_v29 = vsel %vm163_vm13, 1.0, %v2084_v5  ;;  %vm77_vm14 = vcmp.eq.s32.totalorder %v69_v12, 0  ;;  %vm78_vm15 = vcmp.eq.s32.totalorder %v70_v18, 0 }
  0x2f   :  { %v1551_v30 = vsel %vm77_vm14, 1.0, %v2084_v5  ;;  %v1552_v31 = vsel %vm78_vm15, 1.0, %v2084_v5  ;;  %vm79_vm0 = vcmp.eq.s32.totalorder %v71_v21, 0  ;;  %v1979_v32 = vpack.i.bf16 %v1561_v29, %v1560_v26 }
  0x30   :  { %vm80_vm1 = vcmp.eq.s32.totalorder %v72_v27, 0  ;;  %vm247_vm2 = vcmp.eq.s32.totalorder %v69_v12, 2  ;;  %v1974_v33 = vpack.i.bf16 %v1552_v31, %v1551_v30  ;;  %v1553_v34 = vsel %vm79_vm0, 1.0, %v2084_v5  ;;  %1781 = vmatpush3.bf16.msra.mxu1 %v2009_v48 }
  0x31   :  { %vm248_vm3 = vcmp.eq.s32.totalorder %v70_v18, 2  ;;  %vm249_vm4 = vcmp.eq.s32.totalorder %v71_v21, 2  ;;  %v1554_v35 = vsel %vm80_vm1, 1.0, %v2084_v5  ;;  %v1569_v36 = vsel %vm247_vm2, 1.0, %v2084_v5  ;;  %1782 = vmatprep.subr.bf16.mxu1 %v2010_v49 }
  0x32   :  { %1970 = vperm.xlu1 %1953, %v1969_v24   ;;  %1965 = vperm.xlu0 %1942, %v1964_v28   ;;  %v1570_v37 = vsel %vm248_vm3, 1.0, %v2084_v5  ;;  %vm250_vm5 = vcmp.eq.s32.totalorder %v72_v27, 2  ;;  %v1571_v38 = vsel %vm249_vm4, 1.0, %v2084_v5  ;;  %vm164_vm6 = vcmp.eq.s32.totalorder %v71_v21, 1 }
  0x33   :  { %v1572_v39 = vsel %vm250_vm5, 1.0, %v2084_v5  ;;  %vm165_vm7 = vcmp.eq.s32.totalorder %v72_v27, 1  ;;  %v1562_v40 = vsel %vm164_vm6, 1.0, %v2084_v5  ;;  %v1989_v42 = vpack.i.bf16 %v1554_v35, %v1553_v34 }
  0x34   :  { %v1563_v41 = vsel %vm165_vm7, 1.0, %v2084_v5  ;;  %v1984_v43 = vpack.i.bf16 %v1570_v37, %v1569_v36  ;;  %v1999_v44 = vpack.i.bf16 %v1572_v39, %v1571_v38  ;;  %vm360_vm8 = vcmask 523264   ;;  %1783 = vmatpush3.bf16.msra.mxu1 %v2010_v49 }
  0x35   :  { %v1994_v45 = vpack.i.bf16 %v1563_v41, %v1562_v40  ;;  %1770 = vmatprep.mubr.msk.bf16.mxu0 %vm360_vm8, %v2203_v46  ;;  %vm1350_vm9 = vcmask 261120   ;;  %vm1455_vm10 = vcmask 130048  }
  0x36   :  { %1980 = vperm.xlu1 %1953, %v1979_v32   ;;  %1975 = vperm.xlu0 %1942, %v1974_v33  }
  0x3a   :  { %1990 = vperm.xlu1 %1953, %v1989_v42   ;;  %1985 = vperm.xlu0 %1942, %v1984_v43  }
  0x3e   :  { %2000 = vperm.xlu1 %1953, %v1999_v44   ;;  %1995 = vperm.xlu0 %1942, %v1994_v45  }
  0xa9   :  { %v1956_v50 = vpop.permute.xlu1 %1955  ;;  %v1945_v51 = vpop.permute.xlu0 %1944 }
  0xaa   :  { %v1947_v52 = vunpack.i.h.bf16 %v1945_v51  ;;  %v1946_v53 = vunpack.i.l.bf16 %v1945_v51  ;;  %v1958_v60 = vunpack.i.h.bf16 %v1956_v50  ;;  %v1957_v61 = vunpack.i.l.bf16 %v1956_v50 }
  0xac   :  { %v143_v3 = vmul.f32 %v1947_v52, %v2218_v57  ;;  %v142_v4 = vmul.f32 %v1946_v53, %v2218_v57  ;;  %v313_v11 = vmul.f32 %v1958_v60, %v2220_v62  ;;  %v312_v12 = vmul.f32 %v1957_v61, %v2220_v62 }
  0xad   :  { %v1961_v54 = vpop.permute.xlu1 %1960  ;;  %v1950_v56 = vpop.permute.xlu0 %1949 }
  0xae   :  { %v1952_v58 = vunpack.i.h.bf16 %v1950_v56  ;;  %v1951_v59 = vunpack.i.l.bf16 %v1950_v56  ;;  %v1963_v63 = vunpack.i.h.bf16 %v1961_v54  ;;  %v1962_v0 = vunpack.i.l.bf16 %v1961_v54 }
  0xb0   :  { %v228_v1 = vmul.f32 %v1952_v58, %v2216_v55  ;;  %v227_v2 = vmul.f32 %v1951_v59, %v2216_v55  ;;  %v145_v15 = vmul.f32 %v1963_v63, %v2218_v57  ;;  %v144_v16 = vmul.f32 %v1962_v0, %v2218_v57 }
  0xb1   :  { %v1971_v5 = vpop.permute.xlu1 %1970  ;;  %v1966_v6 = vpop.permute.xlu0 %1965 }
  0xb2   :  { %v1973_v7 = vunpack.i.h.bf16 %v1971_v5  ;;  %v1972_v8 = vunpack.i.l.bf16 %v1971_v5  ;;  %v1968_v9 = vunpack.i.h.bf16 %v1966_v6  ;;  %v1967_v10 = vunpack.i.l.bf16 %v1966_v6 }
  0xb3   :  { %v235_v13 = vadd.f32 %v227_v2, %v142_v4  ;;  %v236_v14 = vadd.f32 %v228_v1, %v143_v3 }
  0xb4   :  { %v230_v17 = vmul.f32 %v1968_v9, %v2216_v55  ;;  %v229_v18 = vmul.f32 %v1967_v10, %v2216_v55  ;;  %v315_v19 = vmul.f32 %v1973_v7, %v2220_v62  ;;  %v314_v20 = vmul.f32 %v1972_v8, %v2220_v62  ;;  %v2011_v9 = vld [vmem:[%s2552_s3 + $0x18] sm:$0xff]  }
  0xb5   :  { %v1981_v21 = vpop.permute.xlu1 %1980  ;;  %v1976_v22 = vpop.permute.xlu0 %1975  ;;  %v2234_v23 = vadd.f32 %v312_v12, %v235_v13  ;;  %v2236_v24 = vadd.f32 %v313_v11, %v236_v14  ;;  %1784 = vmatprep.subr.bf16.mxu1 %v2011_v9 }
  0xb6   :  { %v238_v25 = vadd.f32 %v230_v17, %v145_v15  ;;  %v237_v26 = vadd.f32 %v229_v18, %v144_v16  ;;  %v1983_v27 = vunpack.i.h.bf16 %v1981_v21  ;;  %v1982_v28 = vunpack.i.l.bf16 %v1981_v21  ;;  %1785 = vmatpush3.bf16.msra.mxu1 %v2011_v9 }
  0xb7   :  { %v1978_v29 = vunpack.i.h.bf16 %v1976_v22  ;;  %v1977_v30 = vunpack.i.l.bf16 %v1976_v22  ;;  %v336_v31 = vpack.c.bf16 %v2236_v24, %v2234_v23  ;;  %v2012_v22 = vld [vmem:[%s2552_s3 + $0x20] sm:$0xff]  }
  0xb8   :  { %v232_v32 = vmul.f32 %v1983_v27, %v2216_v55  ;;  %v231_v33 = vmul.f32 %v1982_v28, %v2216_v55  ;;  %v2242_v34 = vadd.f32 %v314_v20, %v237_v26  ;;  %v2244_v35 = vadd.f32 %v315_v19, %v238_v25  ;;  %v2013_v25 = vld [vmem:[%s2552_s3 + $0x28] sm:$0xff]   ;;  %1810 = vmatprep.subr.bf16.mxu1 %v2012_v22  ;;  %v2014_v26 = vld [vmem:[%s2552_s3 + $0x30] sm:$0xff]   ;;  %v1582_v27 = vld [vmem:[%s2553_s4] ss:$0 sm:$0xff] }
  0xb9   :  { %v147_v36 = vmul.f32 %v1978_v29, %v2218_v57  ;;  %v146_v37 = vmul.f32 %v1977_v30, %v2218_v57  ;;  %1762 = vmatprep.subr.bf16.mxu0 %v336_v31  ;;  %v1991_v38 = vpop.permute.xlu1 %1990  ;;  %v1986_v39 = vpop.permute.xlu0 %1985 }
  0xba   :  { %v1988_v40 = vunpack.i.h.bf16 %v1986_v39  ;;  %v1987_v41 = vunpack.i.l.bf16 %v1986_v39  ;;  %1763 = vmatpush3.bf16.msra.mxu0 %v336_v31  ;;  %v337_v42 = vpack.c.bf16 %v2244_v35, %v2242_v34  ;;  %v1993_v48 = vunpack.i.h.bf16 %v1991_v38 }
  0xbb   :  { %v240_v43 = vadd.f32 %v232_v32, %v147_v36  ;;  %v239_v44 = vadd.f32 %v231_v33, %v146_v37  ;;  %v1992_v49 = vunpack.i.l.bf16 %v1991_v38 }
  0xbc   :  { %v317_v45 = vmul.f32 %v1988_v40, %v2220_v62  ;;  %v316_v47 = vmul.f32 %v1987_v41, %v2220_v62  ;;  %1764 = vmatprep.subr.bf16.mxu0 %v337_v42  ;;  %v149_v61 = vmul.f32 %v1993_v48, %v2218_v57 }
  0xbd   :  { %v2001_v50 = vpop.permute.xlu1 %2000  ;;  %v1996_v51 = vpop.permute.xlu0 %1995  ;;  %v148_v63 = vmul.f32 %v1992_v49, %v2218_v57  ;;  %v2278_v57 = vld [vmem:[%s2551_s2 + $0x10] sm:$0xff]  }
  0xbe   :  { %v2252_v52 = vadd.f32 %v316_v47, %v239_v44  ;;  %v2254_v53 = vadd.f32 %v317_v45, %v240_v43  ;;  %1765 = vmatpush3.bf16.msra.mxu0 %v337_v42  ;;  %v2003_v54 = vunpack.i.h.bf16 %v2001_v50  ;;  %v2002_v56 = vunpack.i.l.bf16 %v2001_v50 }
  0xbf   :  { %v1998_v58 = vunpack.i.h.bf16 %v1996_v51  ;;  %v1997_v59 = vunpack.i.l.bf16 %v1996_v51 }
  0xc0   :  { %v338_v60 = vpack.c.bf16 %v2254_v53, %v2252_v52  ;;  %v319_v2 = vmul.f32 %v2003_v54, %v2220_v62  ;;  %v318_v3 = vmul.f32 %v2002_v56, %v2220_v62  ;;  %v2287_v62 = vld [vmem:[%s2551_s2 + $0x18] sm:$0xff]  }
  0xc1   :  { %v234_v0 = vmul.f32 %v1998_v58, %v2216_v55  ;;  %v233_v1 = vmul.f32 %v1997_v59, %v2216_v55  ;;  %v2273_v55 = vld [vmem:[%s2551_s2 + $0x8] sm:$0xff]  }
  0xc2   :  { %1766 = vmatprep.subr.bf16.mxu0 %v338_v60 }
  0xc3   :  { %v242_v4 = vadd.f32 %v234_v0, %v149_v61  ;;  %v241_v5 = vadd.f32 %v233_v1, %v148_v63  ;;  %1767 = vmatpush3.bf16.msra.mxu0 %v338_v60 }
  0xc5   :  { %v2264_v6 = vadd.f32 %v318_v3, %v241_v5  ;;  %v2266_v7 = vadd.f32 %v319_v2, %v242_v4 }
  0xc7   :  { %v339_v8 = vpack.c.bf16 %v2266_v7, %v2264_v6 }
  0xc9   :  { %1768 = vmatprep.subr.bf16.mxu0 %v339_v8 }
  0xca   :  { %1769 = vmatpush3.bf16.msra.mxu0 %v339_v8 }
  0xcd   :  { %1771 = vmatmul.mubr.msk.bf16.vlgmr.msra.gmra.mrb[0].mxu0 %vm360_vm8, %v2273_v55 }
  0xce   :  { %1774 = vmatprep.mubr.msk.bf16.mxu0 %vm360_vm8, %v2278_v57 }
  0xd5   :  { %1775 = vmatmul.mubr.msk.bf16.gmra.mrb[4].mxu0 %vm360_vm8, %v2287_v62 }
  0xd6   :  { %1802 = vmatprep.mubr.msk.bf16.mxu0 %vm360_vm8, %v2203_v46 }
 0x1a0   :  { %v1772_v10 = vpop.f32.mrb[0].mxu0 }
 0x1a1   :  { %v407_v11 = vpop.f32.mrb[1].mxu0 }
 0x1a2   :  { %v1773_v12 = vpop.f32.mrb[2].mxu0 }
 0x1a3   :  { %v439_v13 = vpack.c.bf16 %v1773_v12, %v1772_v10  ;;  %v410_v14 = vpop.f32.mrb[3].mxu0 }
 0x1a4   :  { %v438_v15 = vpack.c.bf16 %v410_v14, %v407_v11 }
 0x1a6   :  { %1786 = vmatprep.mubr.msk.bf16.mxu1 %vm360_vm8, %v438_v15  ;;  %v2016_v15 = vld [vmem:[%s2552_s3 + $0x40] sm:$0xff]  }
 0x1a7   :  { %1787 = vmatmul.mubr.msk.bf16.vlgmr.msra.gmra.mrb[0].mxu1 %vm360_vm8, %v439_v13 }
 0x1a8   :  { %v1776_v16 = vpop.f32.mrb[4].mxu0  ;;  %1811 = vmatpush3.bf16.msra.mxu1 %v2012_v22 }
 0x1a9   :  { %v423_v17 = vpop.f32.mrb[5].mxu0  ;;  %1812 = vmatprep.subr.bf16.mxu1 %v2013_v25 }
 0x1aa   :  { %v1777_v18 = vpop.f32.mrb[6].mxu0 }
 0x1ab   :  { %v441_v19 = vpack.c.bf16 %v1777_v18, %v1776_v16  ;;  %v426_v20 = vpop.f32.mrb[7].mxu0  ;;  %v2017_v16 = vld [vmem:[%s2552_s3 + $0x48] sm:$0xff]   ;;  %v1604_v18 = vld [vmem:[%s2553_s4 + $0x1] ss:$0 sm:$0xff] }
 0x1ac   :  { %v440_v21 = vpack.c.bf16 %v426_v20, %v423_v17  ;;  %1813 = vmatpush3.bf16.msra.mxu1 %v2013_v25  ;;  %v2018_v17 = vld [vmem:[%s2552_s3 + $0x50] sm:$0xff]  }
 0x1ad   :  { %1814 = vmatprep.subr.bf16.mxu1 %v2014_v26 }
 0x1ae   :  { %1790 = vmatprep.mubr.msk.bf16.mxu1 %vm360_vm8, %v440_v21 }
 0x1af   :  { %1791 = vmatmul.mubr.msk.bf16.gmra.mrb[4].mxu1 %vm360_vm8, %v441_v19 }
 0x1b0   :  { %1815 = vmatpush3.bf16.msra.mxu1 %v2014_v26 }
 0x27a   :  { %v1788_v28 = vpop.f32.mrb[0].mxu1 }
 0x27b   :  { %v527_v29 = vpop.f32.mrb[1].mxu1  ;;  %v536_v30 = vadd.f32 %v1788_v28, %v1582_v27 }
 0x27c   :  { %v528_v31 = vadd.f32 %v1582_v27, %v527_v29  ;;  %v1789_v32 = vpop.f32.mrb[2].mxu1 }
 0x27d   :  { %v539_v33 = vadd.f32 %v1789_v32, %v1582_v27  ;;  %v530_v36 = vpop.f32.mrb[3].mxu1  ;;  %v560_v40 = vmax.f32 %v536_v30, 0.0 }
 0x27e   :  { %v558_v37 = vmax.f32 %v528_v31, 0.0  ;;  %v531_v38 = vadd.f32 %v1582_v27, %v530_v36 }
 0x27f   :  { %v561_v39 = vmax.f32 %v539_v33, 0.0  ;;  %v2322_v48 = vadd.f32 %v560_v40, %v2242_v34 }
 0x280   :  { %v559_v41 = vmax.f32 %v531_v38, 0.0  ;;  %v2313_v42 = vadd.f32 %v558_v37, %v2234_v23 }
 0x281   :  { %v2316_v43 = vadd.f32 %v561_v39, %v2244_v35 }
 0x282   :  { %v2319_v44 = vadd.f32 %v559_v41, %v2236_v24  ;;  %v1792_v45 = vpop.f32.mrb[4].mxu1 }
 0x283   :  { %v543_v47 = vpop.f32.mrb[5].mxu1  ;;  %v552_v49 = vadd.f32 %v1792_v45, %v1582_v27  ;;  %v575_v24 = vpack.c.bf16 %v2316_v43, %v2322_v48 }
 0x284   :  { %v544_v50 = vadd.f32 %v1582_v27, %v543_v47  ;;  %v1793_v51 = vpop.f32.mrb[6].mxu1  ;;  %v574_v54 = vpack.c.bf16 %v2319_v44, %v2313_v42 }
 0x285   :  { %v555_v56 = vadd.f32 %v1793_v51, %v1582_v27  ;;  %v546_v23 = vpop.f32.mrb[7].mxu1  ;;  %v564_v60 = vmax.f32 %v552_v49, 0.0 }
 0x286   :  { %v562_v58 = vmax.f32 %v544_v50, 0.0  ;;  %v547_v59 = vadd.f32 %v1582_v27, %v546_v23  ;;  %1794 = vmatprep.subr.bf16.mxu0 %v574_v54 }
 0x287   :  { %v565_v35 = vmax.f32 %v555_v56, 0.0  ;;  %1795 = vmatpush3.bf16.msra.mxu0 %v574_v54  ;;  %v2338_v1 = vadd.f32 %v564_v60, %v2264_v6 }
 0x288   :  { %v563_v61 = vmax.f32 %v547_v59, 0.0  ;;  %1796 = vmatprep.subr.bf16.mxu0 %v575_v24  ;;  %v2329_v34 = vadd.f32 %v562_v58, %v2252_v52  ;;  %v2015_v52 = vld [vmem:[%s2552_s3 + $0x38] sm:$0xff]  }
 0x289   :  { %v2332_v63 = vadd.f32 %v565_v35, %v2266_v7  ;;  %1816 = vmatprep.subr.bf16.mxu1 %v2015_v52 }
 0x28a   :  { %v2335_v0 = vadd.f32 %v563_v61, %v2254_v53  ;;  %1817 = vmatpush3.bf16.msra.mxu1 %v2015_v52  ;;  %v2019_v61 = vld [vmem:[%s2552_s3 + $0x58] sm:$0xff]  }
 0x28b   :  { %1797 = vmatpush3.bf16.msra.mxu0 %v575_v24  ;;  %v577_v3 = vpack.c.bf16 %v2332_v63, %v2338_v1  ;;  %1842 = vmatprep.subr.bf16.mxu1 %v2016_v15 }
 0x28c   :  { %v576_v2 = vpack.c.bf16 %v2335_v0, %v2329_v34 }
 0x28e   :  { %1798 = vmatprep.subr.bf16.mxu0 %v576_v2 }
 0x28f   :  { %1799 = vmatpush3.bf16.msra.mxu0 %v576_v2 }
 0x290   :  { %1800 = vmatprep.subr.bf16.mxu0 %v577_v3 }
 0x293   :  { %1801 = vmatpush3.bf16.msra.mxu0 %v577_v3 }
 0x296   :  { %1803 = vmatmul.mubr.msk.bf16.vlgmr.msra.gmra.mrb[8].mxu0 %vm360_vm8, %v2273_v55 }
 0x297   :  { %1806 = vmatprep.mubr.msk.bf16.mxu0 %vm360_vm8, %v2278_v57 }
 0x29e   :  { %1807 = vmatmul.mubr.msk.bf16.gmra.mrb[12].mxu0 %vm360_vm8, %v2287_v62 }
 0x29f   :  { %1834 = vmatprep.mubr.msk.bf16.mxu0 %vm360_vm8, %v2203_v46 }
 0x369   :  { %v1804_v53 = vpop.f32.mrb[8].mxu0 }
 0x36a   :  { %v612_v4 = vpop.f32.mrb[9].mxu0 }
 0x36b   :  { %v1805_v5 = vpop.f32.mrb[10].mxu0 }
 0x36c   :  { %v644_v6 = vpack.c.bf16 %v1805_v5, %v1804_v53  ;;  %v615_v7 = vpop.f32.mrb[11].mxu0 }
 0x36d   :  { %v643_v8 = vpack.c.bf16 %v615_v7, %v612_v4  ;;  %v2020_v7 = vld [vmem:[%s2552_s3 + $0x60] sm:$0xff]  }
 0x36f   :  { %1818 = vmatprep.mubr.msk.bf16.mxu1 %vm360_vm8, %v643_v8  ;;  %v2021_v8 = vld [vmem:[%s2552_s3 + $0x68] sm:$0xff]  }
 0x370   :  { %1819 = vmatmul.mubr.msk.bf16.vlgmr.msra.gmra.mrb[8].mxu1 %vm360_vm8, %v644_v6 }
 0x371   :  { %v1808_v9 = vpop.f32.mrb[12].mxu0  ;;  %1843 = vmatpush3.bf16.msra.mxu1 %v2016_v15 }
 0x372   :  { %v628_v10 = vpop.f32.mrb[13].mxu0  ;;  %1844 = vmatprep.subr.bf16.mxu1 %v2017_v16 }
 0x373   :  { %v1809_v11 = vpop.f32.mrb[14].mxu0 }
 0x374   :  { %v646_v12 = vpack.c.bf16 %v1809_v11, %v1808_v9  ;;  %v631_v13 = vpop.f32.mrb[15].mxu0  ;;  %v2022_v9 = vld [vmem:[%s2552_s3 + $0x70] sm:$0xff]  }
 0x375   :  { %v645_v14 = vpack.c.bf16 %v631_v13, %v628_v10  ;;  %1845 = vmatpush3.bf16.msra.mxu1 %v2017_v16  ;;  %v1626_v10 = vld [vmem:[%s2553_s4 + $0x2] ss:$0 sm:$0xff] }
 0x376   :  { %1846 = vmatprep.subr.bf16.mxu1 %v2018_v17 }
 0x377   :  { %1822 = vmatprep.mubr.msk.bf16.mxu1 %vm360_vm8, %v645_v14 }
 0x378   :  { %1823 = vmatmul.mubr.msk.bf16.gmra.mrb[12].mxu1 %vm360_vm8, %v646_v12 }
 0x379   :  { %1847 = vmatpush3.bf16.msra.mxu1 %v2018_v17 }
 0x37a   :  { %1848 = vmatprep.subr.bf16.mxu1 %v2019_v61 }
 0x37d   :  { %1849 = vmatpush3.bf16.msra.mxu1 %v2019_v61 }
 0x37e   :  { %1874 = vmatprep.subr.bf16.mxu1 %v2020_v7 }
 0x443   :  { %v1820_v19 = vpop.f32.mrb[8].mxu1 }
 0x444   :  { %v734_v20 = vpop.f32.mrb[9].mxu1  ;;  %v743_v21 = vadd.f32 %v1820_v19, %v1604_v18 }
 0x445   :  { %v735_v22 = vadd.f32 %v1604_v18, %v734_v20  ;;  %v1821_v25 = vpop.f32.mrb[10].mxu1 }
 0x446   :  { %v746_v26 = vadd.f32 %v1821_v25, %v1604_v18  ;;  %v737_v27 = vpop.f32.mrb[11].mxu1  ;;  %v767_v31 = vmax.f32 %v743_v21, 0.0 }
 0x447   :  { %v765_v28 = vmax.f32 %v735_v22, 0.0  ;;  %v738_v29 = vadd.f32 %v1604_v18, %v737_v27 }
 0x448   :  { %v768_v30 = vmax.f32 %v746_v26, 0.0  ;;  %v2381_v40 = vadd.f32 %v767_v31, %v2322_v48 }
 0x449   :  { %v766_v32 = vmax.f32 %v738_v29, 0.0  ;;  %v2372_v33 = vadd.f32 %v765_v28, %v2313_v42 }
 0x44a   :  { %v2375_v36 = vadd.f32 %v768_v30, %v2316_v43 }
 0x44b   :  { %v2378_v37 = vadd.f32 %v766_v32, %v2319_v44  ;;  %v1824_v38 = vpop.f32.mrb[12].mxu1 }
 0x44c   :  { %v750_v39 = vpop.f32.mrb[13].mxu1  ;;  %v759_v41 = vadd.f32 %v1824_v38, %v1604_v18  ;;  %v782_v43 = vpack.c.bf16 %v2375_v36, %v2381_v40 }
 0x44d   :  { %v751_v45 = vadd.f32 %v1604_v18, %v750_v39  ;;  %v1825_v47 = vpop.f32.mrb[14].mxu1  ;;  %v781_v49 = vpack.c.bf16 %v2378_v37, %v2372_v33 }
 0x44e   :  { %v762_v50 = vadd.f32 %v1825_v47, %v1604_v18  ;;  %v753_v42 = vpop.f32.mrb[15].mxu1  ;;  %v771_v56 = vmax.f32 %v759_v41, 0.0 }
 0x44f   :  { %v769_v51 = vmax.f32 %v751_v45, 0.0  ;;  %v754_v54 = vadd.f32 %v1604_v18, %v753_v42  ;;  %1826 = vmatprep.subr.bf16.mxu0 %v781_v49 }
 0x450   :  { %v772_v44 = vmax.f32 %v762_v50, 0.0  ;;  %1827 = vmatpush3.bf16.msra.mxu0 %v781_v49  ;;  %v2397_v24 = vadd.f32 %v771_v56, %v2338_v1  ;;  %v2023_v56 = vld [vmem:[%s2552_s3 + $0x78] sm:$0xff]  }
 0x451   :  { %v770_v23 = vmax.f32 %v754_v54, 0.0  ;;  %1828 = vmatprep.subr.bf16.mxu0 %v782_v43  ;;  %v2388_v48 = vadd.f32 %v769_v51, %v2329_v34 }
 0x452   :  { %v2391_v58 = vadd.f32 %v772_v44, %v2332_v63 }
 0x453   :  { %v2394_v59 = vadd.f32 %v770_v23, %v2335_v0  ;;  %v2024_v23 = vld [vmem:[%s2554_s5] sm:$0xff]  }
 0x454   :  { %1829 = vmatpush3.bf16.msra.mxu0 %v782_v43  ;;  %v784_v60 = vpack.c.bf16 %v2391_v58, %v2397_v24 }
 0x455   :  { %v783_v35 = vpack.c.bf16 %v2394_v59, %v2388_v48 }
 0x457   :  { %1830 = vmatprep.subr.bf16.mxu0 %v783_v35 }
 0x458   :  { %1831 = vmatpush3.bf16.msra.mxu0 %v783_v35 }
 0x459   :  { %1832 = vmatprep.subr.bf16.mxu0 %v784_v60 }
 0x45c   :  { %1833 = vmatpush3.bf16.msra.mxu0 %v784_v60 }
 0x45f   :  { %1835 = vmatmul.mubr.msk.bf16.vlgmr.msra.gmra.mrb[16].mxu0 %vm360_vm8, %v2273_v55 }
 0x460   :  { %1838 = vmatprep.mubr.msk.bf16.mxu0 %vm360_vm8, %v2278_v57 }
 0x467   :  { %1839 = vmatmul.mubr.msk.bf16.gmra.mrb[20].mxu0 %vm360_vm8, %v2287_v62 }
 0x468   :  { %1866 = vmatprep.mubr.msk.bf16.mxu0 %vm360_vm8, %v2203_v46 }
 0x532   :  { %v1836_v34 = vpop.f32.mrb[16].mxu0 }
 0x533   :  { %v819_v63 = vpop.f32.mrb[17].mxu0 }
 0x534   :  { %v1837_v0 = vpop.f32.mrb[18].mxu0 }
 0x535   :  { %v851_v1 = vpack.c.bf16 %v1837_v0, %v1836_v34  ;;  %v822_v2 = vpop.f32.mrb[19].mxu0  ;;  %v2025_v0 = vld [vmem:[%s2554_s5 + $0x8] sm:$0xff]  }
 0x536   :  { %v850_v3 = vpack.c.bf16 %v822_v2, %v819_v63  ;;  %v2027_v2 = vld [vmem:[%s2554_s5 + $0x18] sm:$0xff]  }
 0x538   :  { %1850 = vmatprep.mubr.msk.bf16.mxu1 %vm360_vm8, %v850_v3  ;;  %v1648_v3 = vld [vmem:[%s2553_s4 + $0x3] ss:$0 sm:$0xff] }
 0x539   :  { %1851 = vmatmul.mubr.msk.bf16.vlgmr.msra.gmra.mrb[16].mxu1 %vm360_vm8, %v851_v1  ;;  %v2026_v1 = vld [vmem:[%s2554_s5 + $0x10] sm:$0xff]  }
 0x53a   :  { %v1840_v52 = vpop.f32.mrb[20].mxu0  ;;  %1875 = vmatpush3.bf16.msra.mxu1 %v2020_v7 }
 0x53b   :  { %v835_v53 = vpop.f32.mrb[21].mxu0  ;;  %1876 = vmatprep.subr.bf16.mxu1 %v2021_v8 }
 0x53c   :  { %v1841_v4 = vpop.f32.mrb[22].mxu0 }
 0x53d   :  { %v853_v46 = vpack.c.bf16 %v1841_v4, %v1840_v52  ;;  %v838_v5 = vpop.f32.mrb[23].mxu0 }
 0x53e   :  { %v852_v6 = vpack.c.bf16 %v838_v5, %v835_v53  ;;  %1877 = vmatpush3.bf16.msra.mxu1 %v2021_v8 }
 0x53f   :  { %1878 = vmatprep.subr.bf16.mxu1 %v2022_v9 }
 0x540   :  { %1854 = vmatprep.mubr.msk.bf16.mxu1 %vm360_vm8, %v852_v6 }
 0x541   :  { %1855 = vmatmul.mubr.msk.bf16.gmra.mrb[20].mxu1 %vm360_vm8, %v853_v46 }
 0x542   :  { %1879 = vmatpush3.bf16.msra.mxu1 %v2022_v9 }
 0x543   :  { %1880 = vmatprep.subr.bf16.mxu1 %v2023_v56 }
 0x546   :  { %1881 = vmatpush3.bf16.msra.mxu1 %v2023_v56 }
 0x547   :  { %1928 = vmatprep.subr.bf16.mxu1 %v2024_v23 }
 0x60c   :  { %v1852_v11 = vpop.f32.mrb[16].mxu1 }
 0x60d   :  { %v941_v12 = vpop.f32.mrb[17].mxu1  ;;  %v950_v13 = vadd.f32 %v1852_v11, %v1626_v10 }
 0x60e   :  { %v942_v14 = vadd.f32 %v1626_v10, %v941_v12  ;;  %v1853_v15 = vpop.f32.mrb[18].mxu1 }
 0x60f   :  { %v953_v16 = vadd.f32 %v1853_v15, %v1626_v10  ;;  %v944_v17 = vpop.f32.mrb[19].mxu1  ;;  %v974_v21 = vmax.f32 %v950_v13, 0.0 }
 0x610   :  { %v972_v18 = vmax.f32 %v942_v14, 0.0  ;;  %v945_v19 = vadd.f32 %v1626_v10, %v944_v17 }
 0x611   :  { %v975_v20 = vmax.f32 %v953_v16, 0.0  ;;  %v2440_v30 = vadd.f32 %v974_v21, %v2381_v40 }
 0x612   :  { %v973_v22 = vmax.f32 %v945_v19, 0.0  ;;  %v2431_v25 = vadd.f32 %v972_v18, %v2372_v33 }
 0x613   :  { %v2434_v26 = vadd.f32 %v975_v20, %v2375_v36 }
 0x614   :  { %v2437_v27 = vadd.f32 %v973_v22, %v2378_v37  ;;  %v1856_v28 = vpop.f32.mrb[20].mxu1 }
 0x615   :  { %v957_v29 = vpop.f32.mrb[21].mxu1  ;;  %v966_v31 = vadd.f32 %v1856_v28, %v1626_v10  ;;  %v989_v36 = vpack.c.bf16 %v2434_v26, %v2440_v30 }
 0x616   :  { %v958_v32 = vadd.f32 %v1626_v10, %v957_v29  ;;  %v1857_v38 = vpop.f32.mrb[22].mxu1  ;;  %v988_v39 = vpack.c.bf16 %v2437_v27, %v2431_v25 }
 0x617   :  { %v969_v41 = vadd.f32 %v1857_v38, %v1626_v10  ;;  %v960_v33 = vpop.f32.mrb[23].mxu1  ;;  %v978_v49 = vmax.f32 %v966_v31, 0.0 }
 0x618   :  { %v976_v45 = vmax.f32 %v958_v32, 0.0  ;;  %v961_v47 = vadd.f32 %v1626_v10, %v960_v33  ;;  %1858 = vmatprep.subr.bf16.mxu0 %v988_v39 }
 0x619   :  { %v979_v37 = vmax.f32 %v969_v41, 0.0  ;;  %1859 = vmatpush3.bf16.msra.mxu0 %v988_v39  ;;  %v2456_v54 = vadd.f32 %v978_v49, %v2397_v24  ;;  %v1657_v49 = vld [vmem:[%s2555_s6] ss:$0 sm:$0xff] }
 0x61a   :  { %v977_v50 = vmax.f32 %v961_v47, 0.0  ;;  %1860 = vmatprep.subr.bf16.mxu0 %v989_v36  ;;  %v2447_v40 = vadd.f32 %v976_v45, %v2388_v48 }
 0x61b   :  { %v2450_v42 = vadd.f32 %v979_v37, %v2391_v58  ;;  %v2029_v37 = vld [vmem:[%s2556_s7 + $0x8] sm:$0xff]  }
 0x61c   :  { %v2453_v51 = vadd.f32 %v977_v50, %v2394_v59 }
 0x61d   :  { %1861 = vmatpush3.bf16.msra.mxu0 %v989_v36  ;;  %v991_v44 = vpack.c.bf16 %v2450_v42, %v2456_v54  ;;  %v2028_v36 = vld [vmem:[%s2556_s7] sm:$0xff]  }
 0x61e   :  { %v990_v43 = vpack.c.bf16 %v2453_v51, %v2447_v40 }
 0x620   :  { %1862 = vmatprep.subr.bf16.mxu0 %v990_v43 }
 0x621   :  { %1863 = vmatpush3.bf16.msra.mxu0 %v990_v43 }
 0x622   :  { %1864 = vmatprep.subr.bf16.mxu0 %v991_v44 }
 0x625   :  { %1865 = vmatpush3.bf16.msra.mxu0 %v991_v44 }
 0x626   :  { %1890 = vmatprep.subr.bf16.mxu0 %v2024_v23 }
 0x628   :  { %1867 = vmatmul.mubr.msk.bf16.vlgmr.msra.gmra.mrb[24].mxu0 %vm360_vm8, %v2273_v55 }
 0x629   :  { %1870 = vmatprep.mubr.msk.bf16.mxu0 %vm360_vm8, %v2278_v57  ;;  %1891 = vmatpush3.bf16.msra.mxu0 %v2024_v23 }
 0x62a   :  { %1892 = vmatprep.subr.bf16.mxu0 %v2025_v0 }
 0x62d   :  { %1893 = vmatpush3.bf16.msra.mxu0 %v2025_v0 }
 0x62e   :  { %1894 = vmatprep.subr.bf16.mxu0 %v2026_v1 }
 0x630   :  { %1871 = vmatmul.mubr.msk.bf16.gmra.mrb[28].mxu0 %vm360_vm8, %v2287_v62 }
 0x631   :  { %1895 = vmatpush3.bf16.msra.mxu0 %v2026_v1 }
 0x632   :  { %1896 = vmatprep.subr.bf16.mxu0 %v2027_v2 }
 0x635   :  { %1897 = vmatpush3.bf16.msra.mxu0 %v2027_v2 }
 0x6fb   :  { %v1868_v55 = vpop.f32.mrb[24].mxu0 }
 0x6fc   :  { %v1026_v48 = vpop.f32.mrb[25].mxu0 }
 0x6fd   :  { %v1869_v58 = vpop.f32.mrb[26].mxu0 }
 0x6fe   :  { %v1058_v57 = vpack.c.bf16 %v1869_v58, %v1868_v55  ;;  %v1029_v59 = vpop.f32.mrb[27].mxu0 }
 0x6ff   :  { %v1057_v24 = vpack.c.bf16 %v1029_v59, %v1026_v48 }
 0x701   :  { %1882 = vmatprep.mubr.msk.bf16.mxu1 %vm360_vm8, %v1057_v24 }
 0x702   :  { %1883 = vmatmul.mubr.msk.bf16.vlgmr.msra.gmra.mrb[24].mxu1 %vm360_vm8, %v1058_v57 }
 0x703   :  { %v1872_v62 = vpop.f32.mrb[28].mxu0  ;;  %1932 = vmatpush3.bf16.msra.mxu1 %v2024_v23 }
 0x704   :  { %v1042_v35 = vpop.f32.mrb[29].mxu0  ;;  %1929 = vmatprep.subr.bf16.mxu1 %v2025_v0 }
 0x705   :  { %v1873_v60 = vpop.f32.mrb[30].mxu0 }
 0x706   :  { %v1060_v61 = vpack.c.bf16 %v1873_v60, %v1872_v62  ;;  %v1045_v34 = vpop.f32.mrb[31].mxu0 }
 0x707   :  { %v1059_v63 = vpack.c.bf16 %v1045_v34, %v1042_v35  ;;  %1933 = vmatpush3.bf16.msra.mxu1 %v2025_v0 }
 0x708   :  { %1930 = vmatprep.subr.bf16.mxu1 %v2026_v1 }
 0x709   :  { %1886 = vmatprep.mubr.msk.bf16.mxu1 %vm360_vm8, %v1059_v63 }
 0x70a   :  { %1887 = vmatmul.mubr.msk.bf16.gmra.mrb[28].mxu1 %vm360_vm8, %v1060_v61 }
 0x70b   :  { %1934 = vmatpush3.bf16.msra.mxu1 %v2026_v1 }
 0x70c   :  { %1931 = vmatprep.subr.bf16.mxu1 %v2027_v2 }
 0x70f   :  { %1935 = vmatpush3.bf16.msra.mxu1 %v2027_v2 }
 0x710   :  { %1906 = vmatprep.subr.bf16.mxu1 %v2028_v36 }
 0x7d5   :  { %v1884_v52 = vpop.f32.mrb[24].mxu1 }
 0x7d6   :  { %v1157_v53 = vadd.f32 %v1884_v52, %v1648_v3  ;;  %v1148_v4 = vpop.f32.mrb[25].mxu1 }
 0x7d7   :  { %v1149_v46 = vadd.f32 %v1648_v3, %v1148_v4  ;;  %v1885_v5 = vpop.f32.mrb[26].mxu1 }
 0x7d8   :  { %v1181_v6 = vmax.f32 %v1157_v53, 0.0  ;;  %v1160_v7 = vadd.f32 %v1885_v5, %v1648_v3  ;;  %v1151_v8 = vpop.f32.mrb[27].mxu1  ;;  %v1666_v5 = vld [vmem:[%s2557_s8] ss:$0 sm:$0xff] }
 0x7d9   :  { %v1179_v9 = vmax.f32 %v1149_v46, 0.0  ;;  %v1152_v10 = vadd.f32 %v1648_v3, %v1151_v8  ;;  %v2030_v46 = vld [vmem:[#allocation4] sm:$0xff]  }
 0x7da   :  { %v1182_v11 = vmax.f32 %v1160_v7, 0.0  ;;  %v1189_v13 = vadd.f32 %v1181_v6, %v2440_v30  ;;  %1918 = vmatprep.subr.bf16.mxu0 %v2030_v46 }
 0x7db   :  { %v1180_v12 = vmax.f32 %v1152_v10, 0.0  ;;  %v1187_v15 = vadd.f32 %v1179_v9, %v2431_v25 }
 0x7dc   :  { %v1190_v14 = vadd.f32 %v1182_v11, %v2434_v26 }
 0x7dd   :  { %v1188_v16 = vadd.f32 %v1180_v12, %v2437_v27  ;;  %v1888_v17 = vpop.f32.mrb[28].mxu1 }
 0x7de   :  { %v1196_v18 = vpack.c.bf16 %v1190_v14, %v1189_v13  ;;  %v1173_v19 = vadd.f32 %v1888_v17, %v1648_v3  ;;  %v1164_v20 = vpop.f32.mrb[29].mxu1 }
 0x7df   :  { %v1195_v21 = vpack.c.bf16 %v1188_v16, %v1187_v15  ;;  %v1165_v22 = vadd.f32 %v1648_v3, %v1164_v20  ;;  %v1889_v28 = vpop.f32.mrb[30].mxu1 }
 0x7e0   :  { %v1185_v29 = vmax.f32 %v1173_v19, 0.0  ;;  %v1176_v31 = vadd.f32 %v1889_v28, %v1648_v3  ;;  %v1167_v32 = vpop.f32.mrb[31].mxu1 }
 0x7e1   :  { %v1183_v38 = vmax.f32 %v1165_v22, 0.0  ;;  %v1168_v39 = vadd.f32 %v1648_v3, %v1167_v32  ;;  %1898 = vmatprep.mubr.msk.bf16.mxu0 %vm360_vm8, %v1195_v21 }
 0x7e2   :  { %v1186_v30 = vmax.f32 %v1176_v31, 0.0  ;;  %1899 = vmatmul.mubr.msk.bf16.vlgmr.msra.gmra.mrb[32].mxu0 %vm360_vm8, %v1196_v18  ;;  %v1193_v26 = vadd.f32 %v1185_v29, %v2456_v54 }
 0x7e3   :  { %v1184_v25 = vmax.f32 %v1168_v39, 0.0  ;;  %v1191_v41 = vadd.f32 %v1183_v38, %v2447_v40  ;;  %1919 = vmatpush3.bf16.msra.mxu0 %v2030_v46 }
 0x7e4   :  { %v1194_v27 = vadd.f32 %v1186_v30, %v2450_v42 }
 0x7e5   :  { %v1192_v33 = vadd.f32 %v1184_v25, %v2453_v51 }
 0x7e6   :  { %v1198_v45 = vpack.c.bf16 %v1194_v27, %v1193_v26 }
 0x7e7   :  { %v1197_v47 = vpack.c.bf16 %v1192_v33, %v1191_v41  ;;  %v1673_v33 = vld [vmem:[%s2559_s10] ss:$0 sm:$0xff] }
 0x7e9   :  { %1902 = vmatprep.mubr.msk.bf16.mxu1 %vm360_vm8, %v1197_v47 }
 0x7ea   :  { %1903 = vmatmul.mubr.msk.bf16.vlgmr.msra.gmra.mrb[32].mxu1 %vm360_vm8, %v1198_v45 }
 0x7eb   :  { %1907 = vmatpush3.bf16.msra.mxu1 %v2028_v36 }
 0x7ec   :  { %1908 = vmatprep.subr.bf16.mxu1 %v2029_v37 }
 0x7ef   :  { %1909 = vmatpush3.bf16.msra.mxu1 %v2029_v37 }
 0x8b5   :  { %v1900_v50 = vpop.f32.mrb[32].mxu0 }
 0x8b6   :  { %v1293_v40 = vadd.f32 %v1900_v50, %v1657_v49  ;;  %v1284_v42 = vpop.f32.mrb[33].mxu0 }
 0x8b7   :  { %v1285_v51 = vadd.f32 %v1657_v49, %v1284_v42  ;;  %v1901_v54 = vpop.f32.mrb[34].mxu0 }
 0x8b8   :  { %v1296_v43 = vadd.f32 %v1901_v54, %v1657_v49  ;;  %v1287_v44 = vpop.f32.mrb[35].mxu0  ;;  %v1317_v23 = vmax.f32 %v1293_v40, 0.0 }
 0x8b9   :  { %v1288_v56 = vadd.f32 %v1657_v49, %v1287_v44  ;;  %v1315_v48 = vmax.f32 %v1285_v51, 0.0 }
 0x8ba   :  { %v1318_v55 = vmax.f32 %v1296_v43, 0.0 }
 0x8bb   :  { %v1316_v58 = vmax.f32 %v1288_v56, 0.0 }
 0x8bc   :  { %v1324_v57 = vpack.c.bf16 %v1318_v55, %v1317_v23 }
 0x8bd   :  { %v1323_v59 = vpack.c.bf16 %v1316_v58, %v1315_v48  ;;  %v1904_v24 = vpop.f32.mrb[32].mxu1 }
 0x8be   :  { %v1309_v62 = vadd.f32 %v1904_v24, %v1657_v49  ;;  %v1300_v35 = vpop.f32.mrb[33].mxu1 }
 0x8bf   :  { %v1301_v60 = vadd.f32 %v1657_v49, %v1300_v35  ;;  %v1905_v61 = vpop.f32.mrb[34].mxu1  ;;  %1910 = vmatprep.mubr.msk.bf16.mxu1 %vm1350_vm9, %v1323_v59 }
 0x8c0   :  { %v1312_v34 = vadd.f32 %v1905_v61, %v1657_v49  ;;  %v1303_v63 = vpop.f32.mrb[35].mxu1  ;;  %1911 = vmatmul.mubr.msk.bf16.vlgmr.msra.gmra.mrb[36].mxu1 %vm1350_vm9, %v1324_v57  ;;  %v1321_v1 = vmax.f32 %v1309_v62, 0.0 }
 0x8c1   :  { %v1304_v0 = vadd.f32 %v1657_v49, %v1303_v63  ;;  %v1319_v3 = vmax.f32 %v1301_v60, 0.0 }
 0x8c2   :  { %v1322_v2 = vmax.f32 %v1312_v34, 0.0 }
 0x8c3   :  { %v1320_v52 = vmax.f32 %v1304_v0, 0.0 }
 0x8c4   :  { %v1326_v53 = vpack.c.bf16 %v1322_v2, %v1321_v1 }
 0x8c5   :  { %v1325_v4 = vpack.c.bf16 %v1320_v52, %v1319_v3 }
 0x8c7   :  { %1914 = vmatprep.mubr.msk.bf16.mxu1 %vm1350_vm9, %v1325_v4 }
 0x8c8   :  { %1915 = vmatmul.mubr.msk.bf16.gmra.mrb[40].mxu1 %vm1350_vm9, %v1326_v53 }
 0x993   :  { %v1912_v6 = vpop.f32.mrb[36].mxu1 }
 0x994   :  { %v1406_v7 = vadd.f32 %v1912_v6, %v1666_v5  ;;  %v1397_v8 = vpop.f32.mrb[37].mxu1 }
 0x995   :  { %v1398_v9 = vadd.f32 %v1666_v5, %v1397_v8  ;;  %v1913_v10 = vpop.f32.mrb[38].mxu1 }
 0x996   :  { %v1409_v11 = vadd.f32 %v1913_v10, %v1666_v5  ;;  %v1400_v12 = vpop.f32.mrb[39].mxu1  ;;  %v1430_v14 = vmax.f32 %v1406_v7, 0.0 }
 0x997   :  { %v1401_v13 = vadd.f32 %v1666_v5, %v1400_v12  ;;  %v1428_v16 = vmax.f32 %v1398_v9, 0.0 }
 0x998   :  { %v1431_v15 = vmax.f32 %v1409_v11, 0.0 }
 0x999   :  { %v1429_v17 = vmax.f32 %v1401_v13, 0.0 }
 0x99a   :  { %v1437_v18 = vpack.c.bf16 %v1431_v15, %v1430_v14 }
 0x99b   :  { %v1436_v19 = vpack.c.bf16 %v1429_v17, %v1428_v16  ;;  %v1916_v20 = vpop.f32.mrb[40].mxu1 }
 0x99c   :  { %v1422_v21 = vadd.f32 %v1916_v20, %v1666_v5  ;;  %v1413_v22 = vpop.f32.mrb[41].mxu1 }
 0x99d   :  { %v1414_v28 = vadd.f32 %v1666_v5, %v1413_v22  ;;  %v1917_v29 = vpop.f32.mrb[42].mxu1  ;;  %1920 = vmatprep.mubr.msk.bf16.mxu0 %vm1455_vm10, %v1436_v19 }
 0x99e   :  { %v1425_v31 = vadd.f32 %v1917_v29, %v1666_v5  ;;  %v1416_v32 = vpop.f32.mrb[43].mxu1  ;;  %1921 = vmatmul.mubr.msk.bf16.vlgmr.msra.gmra.mrb[36].mxu0 %vm1455_vm10, %v1437_v18  ;;  %v1434_v39 = vmax.f32 %v1422_v21, 0.0 }
 0x99f   :  { %v1417_v38 = vadd.f32 %v1666_v5, %v1416_v32  ;;  %v1432_v25 = vmax.f32 %v1414_v28, 0.0 }
 0x9a0   :  { %v1435_v30 = vmax.f32 %v1425_v31, 0.0 }
 0x9a1   :  { %v1433_v26 = vmax.f32 %v1417_v38, 0.0 }
 0x9a2   :  { %v1439_v27 = vpack.c.bf16 %v1435_v30, %v1434_v39 }
 0x9a3   :  { %v1438_v41 = vpack.c.bf16 %v1433_v26, %v1432_v25 }
 0x9a5   :  { %1924 = vmatprep.mubr.msk.bf16.mxu0 %vm1455_vm10, %v1438_v41 }
 0x9a6   :  { %1925 = vmatmul.mubr.msk.bf16.gmra.mrb[40].mxu0 %vm1455_vm10, %v1439_v27 }
 0xa71   :  { %v1922_v45 = vpop.f32.mrb[36].mxu0 }
 0xa72   :  { %v1511_v47 = vadd.f32 %v1922_v45, %v1673_v33  ;;  %v1502_v36 = vpop.f32.mrb[37].mxu0 }
 0xa73   :  { %v1503_v37 = vadd.f32 %v1673_v33, %v1502_v36  ;;  %v1923_v49 = vpop.f32.mrb[38].mxu0 }
 0xa74   :  { %1535 = vst [vmem:[%s2560_s11 + $0x10] sm:$0xff] %v1511_v47  ;;  %v1514_v50 = vadd.f32 %v1923_v49, %v1673_v33  ;;  %v1505_v40 = vpop.f32.mrb[39].mxu0 }
 0xa75   :  { %1533 = vst [vmem:[%s2560_s11] sm:$0xff] %v1503_v37  ;;  %v1506_v42 = vadd.f32 %v1673_v33, %v1505_v40 }
 0xa76   :  { %1536 = vst [vmem:[%s2560_s11 + $0x18] sm:$0xff] %v1514_v50 }
 0xa77   :  { %1534 = vst [vmem:[%s2560_s11 + $0x8] sm:$0xff] %v1506_v42 }
 0xa79   :  { %v1926_v51 = vpop.f32.mrb[40].mxu0 }
 0xa7a   :  { %v1527_v54 = vadd.f32 %v1926_v51, %v1673_v33  ;;  %v1518_v43 = vpop.f32.mrb[41].mxu0 }
 0xa7b   :  { %v1519_v44 = vadd.f32 %v1673_v33, %v1518_v43  ;;  %v1927_v56 = vpop.f32.mrb[42].mxu0 }
 0xa7c   :  { %1539 = vst [vmem:[%s2560_s11 + $0x30] sm:$0xff] %v1527_v54  ;;  %v1530_v23 = vadd.f32 %v1927_v56, %v1673_v33  ;;  %v1521_v55 = vpop.f32.mrb[43].mxu0 }
 0xa7d   :  { %1537 = vst [vmem:[%s2560_s11 + $0x20] sm:$0xff] %v1519_v44  ;;  %v1522_v48 = vadd.f32 %v1673_v33, %v1521_v55 }
 0xa7e   :  { %1540 = vst [vmem:[%s2560_s11 + $0x38] sm:$0xff] %v1530_v23 }
 0xa7f   :  { %1538 = vst [vmem:[%s2560_s11 + $0x28] sm:$0xff] %v1522_v48 }
 0xa80   :  { %1545 = vsyncpa [#allocation3], 1 }
 0xa81   :  { %1546 = vsyncpa [#allocation5], 1 }

</bundles_post_ra>
